<compile_context>
chip_gen: v7x
topology: tpu7x:2x2x1
jax: 0.10.0
libtpu: 0.0.40
codegen_flags: <defaults>
</compile_context>

<pallas_src>
import jax
import jax.numpy as jnp
from jax import lax
from jax.experimental import pallas as pl
from jax.experimental.pallas import tpu as pltpu


def _round_up(x, m):
    return (x + m - 1) // m * m


def _make_kernel(rate, threshold, scale):
    use_dropout = rate > 0.0

    def kernel(ids_ref, table_ref, *rest):
        if use_dropout:
            bits_ref, out_ref = rest
        else:
            (out_ref,) = rest

        ids = ids_ref[...]                               # (tile, 1) int32
        tile = ids.shape[0]
        vocab = table_ref.shape[0]

        # One-hot gather on the MXU: (tile, V) @ (V, D) -> (tile, D).
        # One-hot values are exactly 0/1, so casting to the table dtype is
        # lossless (bf16 table => bf16 MXU fast path).
        iota = lax.broadcasted_iota(jnp.int32, (tile, vocab), 1)
        onehot = (iota == ids).astype(table_ref.dtype)
        emb = jnp.dot(onehot, table_ref[...],
                      preferred_element_type=jnp.float32)  # (tile, D) f32

        if use_dropout:
            # Inverted dropout: keep iff random int32 >= threshold.
            keep = bits_ref[...] >= threshold
            emb = jnp.where(keep, emb * scale, 0.0)

        out_ref[...] = emb.astype(out_ref.dtype)

    return kernel


def embedding_layer(input_vec, table, *, rate=0.0, rng_key=None, token_tile=128):
    """input_vec: int32 [B, S] token ids; table: float [V, D] embedding weight."""
    assert 0.0 <= rate < 1.0, "dropout rate must be in [0, 1)"
    B, S = input_vec.shape
    V, D = table.shape
    N = B * S

    # Tile of token rows per grid step: 128 fills the MXU; shrink (multiple of
    # 8 sublanes) for tiny inputs so we do not pad 8x for nothing.
    tile = min(int(token_tile), _round_up(N, 8))
    n_pad = _round_up(N, tile)

    ids = jnp.zeros((n_pad, 1), jnp.int32).at[:N, 0].set(
        input_vec.reshape(N).astype(jnp.int32))

    in_specs = [
        pl.BlockSpec((tile, 1), lambda i: (i, 0)),   # token-id tile
        pl.BlockSpec((V, D), lambda i: (0, 0)),      # full embedding table
    ]
    args = [ids, table]

    use_dropout = rate > 0.0
    threshold = 0
    if use_dropout:
        if rng_key is None:
            rng_key = jax.random.PRNGKey(0)
        # Uniform 32-bit randoms, reinterpreted as int32 so the in-kernel keep
        # decision is a single signed compare against a precomputed threshold.
        bits = lax.bitcast_convert_type(
            jax.random.bits(rng_key, (n_pad, D), dtype=jnp.uint32), jnp.int32)
        threshold = min(max(int(round(rate * 4294967296.0)) - 2147483648,
                            -2147483648), 2147483647)
        in_specs.append(pl.BlockSpec((tile, D), lambda i: (i, 0)))
        args.append(bits)

    scale = 1.0 / (1.0 - rate) if use_dropout else 1.0

    itemsize = jnp.dtype(table.dtype).itemsize
    bytes_accessed = (n_pad * 4                                  # ids
                      + V * D * itemsize                         # table
                      + (n_pad * D * 4 if use_dropout else 0)    # dropout bits
                      + n_pad * D * itemsize)                    # output
    cost = pl.CostEstimate(flops=2 * n_pad * V * D,
                           transcendentals=0,
                           bytes_accessed=bytes_accessed)

    # Conservative VMEM budget: double-buffered ids/bits/output tiles, the
    # (double-buffered) table block and the (tile, V) one-hot intermediate,
    # with 2x headroom; clamped to [4 MiB, 64 MiB] (v7x physical VMEM).
    vmem_elems = (2 * tile * 1 + 2 * tile * D + 2 * V * D
                  + (2 * tile * D if use_dropout else 0) + tile * V)
    vmem_limit = int(min(max(2 * 4 * vmem_elems, 4 * 1024 * 1024),
                         64 * 1024 * 1024))

    out = pl.pallas_call(
        _make_kernel(rate, threshold, scale),
        out_shape=jax.ShapeDtypeStruct((n_pad, D), table.dtype),
        grid=(n_pad // tile,),
        in_specs=in_specs,
        out_specs=pl.BlockSpec((tile, D), lambda i: (i, 0)),
        compiler_params=pltpu.CompilerParams(
            dimension_semantics=("parallel",),
            vmem_limit_bytes=vmem_limit),
        cost_estimate=cost,
    )(*args)

    return out[:N].reshape(B, S, D)


if __name__ == "__main__":
    key = jax.random.PRNGKey(0)
    V, D = 128, 128          # full_dict_size, input_dim
    B, S = 2, 8
    dropout_rate = 0.1       # embedding_dropout_rate

    k_table, k_ids, k_drop = jax.random.split(key, 3)
    # nn.Embedding default init: weight ~ N(0, 1)
    table = jax.random.normal(k_table, (V, D), dtype=jnp.float32)
    ids = jax.random.randint(k_ids, (B, S), 0, V, dtype=jnp.int32)

    # Eval-mode check (dropout off == nn.Dropout in eval): exact row gather.
    out_eval = embedding_layer(ids, table, rate=0.0)
    jax.block_until_ready(out_eval)
    ref = table[ids]
    assert out_eval.shape == (B, S, D)
    assert jnp.allclose(out_eval, ref, atol=1e-5), "embedding gather mismatch"

    # Training-mode forward: gather + inverted dropout fused in the kernel.
    out = embedding_layer(ids, table, rate=dropout_rate, rng_key=k_drop)
    jax.block_until_ready(out)
    assert out.shape == (B, S, D)
    # Every element is either exactly dropped (0) or the 1/(1-p)-scaled row.
    scaled = ref / (1.0 - dropout_rate)
    ok = jnp.isclose(out, scaled, atol=1e-5) | (out == 0.0)
    assert bool(jnp.all(ok)), "dropout output mismatch"

    print("KERNEL_OK")
</pallas_src>

<mosaic_0001>
module attributes {stable_mosaic.version = 11 : i64} {
  func.func @kernel(%arg0: i32, %arg1: memref<16x1xi32, #tpu.memory_space<vmem>>, %arg2: memref<128x128xf32, #tpu.memory_space<vmem>>, %arg3: memref<16x128xf32, #tpu.memory_space<vmem>>) attributes {dimension_semantics = [#tpu.dimension_semantics<parallel>], iteration_bounds = array<i64: 1>, scalar_prefetch = 0 : i64, scratch_operands = 0 : i64, tpu.core_type = #tpu.core_type<tc>, window_params = [{transform_indices = @transform_0, window_bounds = array<i64: 16, 1>}, {pipeline_mode = #tpu.pipeline_mode<synchronous>, transform_indices = @transform_1, window_bounds = array<i64: 128, 128>}, {transform_indices = @transform_2, window_bounds = array<i64: 16, 128>}]} {
    %c0 = arith.constant 0 : index
    %c0_0 = arith.constant 0 : index
    %0 = vector.load %arg1[%c0, %c0_0] : memref<16x1xi32, #tpu.memory_space<vmem>>, vector<16x1xi32>
    %1 = tpu.iota {dimensions = array<i32: 1>} : vector<16x128xi32>
    %2 = vector.broadcast %0 : vector<16x1xi32> to vector<16x128xi32>
    %3 = arith.cmpi eq, %1, %2 : vector<16x128xi32>
    %4 = arith.extui %3 : vector<16x128xi1> to vector<16x128xi32>
    %5 = arith.sitofp %4 : vector<16x128xi32> to vector<16x128xf32>
    %c0_1 = arith.constant 0 : index
    %c0_2 = arith.constant 0 : index
    %6 = vector.load %arg2[%c0_1, %c0_2] : memref<128x128xf32, #tpu.memory_space<vmem>>, vector<128x128xf32>
    %cst = arith.constant dense<0.000000e+00> : vector<16x128xf32>
    %7 = tpu.matmul %5, %6, %cst {dimension_numbers = #tpu.dot_dimension_numbers<[1], [0], [0], [1], [0, 0, 1, 1], [], []>} : vector<16x128xf32>, vector<128x128xf32>, vector<16x128xf32> -> vector<16x128xf32>
    %c0_3 = arith.constant 0 : index
    %c0_4 = arith.constant 0 : index
    %8 = vector.load %arg3[%c0_3, %c0_4] : memref<16x128xf32, #tpu.memory_space<vmem>>, vector<16x128xf32>
    tpu.vector_store %arg3[%c0_3, %c0_4], %7 {strides = array<i32>} : memref<16x128xf32, #tpu.memory_space<vmem>>, vector<16x128xf32>,
    return
  }
  func.func @transform_0(%arg0: i32) -> (i32, i32) {
    %c0_i32 = arith.constant 0 : i32
    %c0_i32_0 = arith.constant 0 : i32
    return %arg0, %c0_i32 : i32, i32
  }
  func.func @transform_1(%arg0: i32) -> (i32, i32) {
    %c0_i32 = arith.constant 0 : i32
    %c0_i32_0 = arith.constant 0 : i32
    %c0_i32_1 = arith.constant 0 : i32
    return %c0_i32, %c0_i32_0 : i32, i32
  }
  func.func @transform_2(%arg0: i32) -> (i32, i32) {
    %c0_i32 = arith.constant 0 : i32
    %c0_i32_0 = arith.constant 0 : i32
    return %arg0, %c0_i32 : i32, i32
  }
}

</mosaic_0001>

<bundles_post_ra>
// kernel: tpu_custom_call.1
= control target key start
LH: loop header
LB: loop body
LE: loop exit
PB: predicated region body
PF: predicated region fallthrough
CT: control target
= control target key end

     0   :  { %7 = vsyncpa [#allocation3], 0  ;;  %s353_s0 = inlined_call_operand.vmem [shape: s32[16,1], index: 0, kind: input, shape index: {}]   ;;  %s354_s1 = inlined_call_operand.hbm [shape: f32[128,128], index: 1, kind: input, shape index: {}]   ;;  %s355_s2 = inlined_call_operand.hbm [shape: f32[16,128], index: 2, kind: output, shape index: {}]  }
   0x1   :  { %8 = vsyncpa [#allocation4], 0  ;;  %s296_s9 = smov [#allocation2]   ;;  %s248_s13 = scalar_lea.hbm %s354_s1, 2048 }
   0x2   :  { %s16_s10 = sshll.u32 %s296_s9, 4  ;;  %p249_p0 = scmp.ne.s32.totalorder %s354_s1, %s248_s13  ;;  %s17_s10 = int_to_ptr.vmem [resolvable:$true] %s16_s10 }
   0x3   :  { %p252_p1 = scmp.lt.u32.totalorder %s248_s13, %s354_s1 }
   0x5   :  { %p254_p2 = pnand %p252_p1, %p249_p0 }
   0x7   :  { %257 = shalt.err (!%p254_p2)
}
   0x8   :  { %s258_s18 = scalar_lea.vmem %s17_s10, 2048  ;;  %p263_p4 = scmp.lt.s32.totalorder %s17_s10, %s17_s10 }
   0x9   :  { %p259_p3 = scmp.ne.s32.totalorder %s17_s10, %s258_s18  ;;  %p264_p5 = scmp.lt.s32.totalorder %s258_s18, %s258_s18 }
   0xb   :  { %p265_p6 = por %p264_p5, %p263_p4 }
   0xd   :  { %p266_p7 = pnand %p265_p6, %p259_p3 }
   0xf   :  { %269 = shalt.err (!%p266_p7)
}
  0x10   :  { %s297_s19 = smov 128   ;;  %s298_s20 = smov 8  }
  0x11   :  { %22 = dma.hbm_to_vmem [thread:$0]  %s354_s1, 2048, %s17_s10, [#allocation3], %s297_s19, %s297_s19, %s298_s20  }
  0x12   :  { %292 = dma.done.wait [#allocation3], 2048  }
  0x13   :  { %293 = vsyncadd [#allocation3], 4294965248  ;;  %v299_v0 = vmov 0   ;;  %v26_v1 = vld [vmem:[%s353_s0] sm:$0xff]  ;;  %v43_v3 = vld [vmem:[#allocation2 + $0x8] sm:$0xff]  ;;  %v28_v27 = vlaneseq  ;;  %v300_v30 = vmov 1.0  }
  0x14   :  { %247 = vset.pattern.permute.xlu0 %v299_v0  ;;  %v42_v2 = vld [vmem:[#allocation2] sm:$0xff]  ;;  %v44_v4 = vld [vmem:[#allocation2 + $0x10] sm:$0xff]  ;;  %v45_v5 = vld [vmem:[#allocation2 + $0x18] sm:$0xff] }
  0x15   :  { %31 = vperm.xlu0 %247, %v26_v1   ;;  %v27_v6 = vld [vmem:[%s353_s0 + $0x8] sm:$0xff]  ;;  %v209_v7 = vpack.c.bf16 %v43_v3, %v42_v2  ;;  %v213_v8 = vpack.c.bf16 %v45_v5, %v44_v4  ;;  %v46_v9 = vld [vmem:[#allocation2 + $0x20] sm:$0xff]  ;;  %v48_v12 = vld [vmem:[#allocation2 + $0x30] sm:$0xff]  ;;  %v29_v28 = vand.u32 127, %v28_v27  ;;  %s301_s0 = smov [#allocation5]  }
  0x16   :  { %v47_v10 = vld [vmem:[#allocation2 + $0x28] sm:$0xff]  ;;  %v49_v13 = vld [vmem:[#allocation2 + $0x38] sm:$0xff]  ;;  %v50_v15 = vld [vmem:[#allocation2 + $0x40] sm:$0xff]  ;;  %s140_s1 = sshll.u32 %s301_s0, 4  ;;  %s141_s1 = int_to_ptr.vmem [resolvable:$true] %s140_s1 }
  0x17   :  { %210 = vmatprep.subr.bf16.mxu0 %v209_v7  ;;  %v217_v11 = vpack.c.bf16 %v47_v10, %v46_v9  ;;  %v221_v14 = vpack.c.bf16 %v49_v13, %v48_v12  ;;  %v51_v16 = vld [vmem:[#allocation2 + $0x48] sm:$0xff]  ;;  %v52_v18 = vld [vmem:[#allocation2 + $0x50] sm:$0xff]  ;;  %v53_v19 = vld [vmem:[#allocation2 + $0x58] sm:$0xff]  ;;  %s270_s27 = scalar_lea.vmem %s141_s1, 256  ;;  %p275_p9 = scmp.lt.s32.totalorder %s141_s1, %s141_s1 }
  0x18   :  { %212 = vmatpush3.bf16.msra.mxu0 %v209_v7  ;;  %v225_v17 = vpack.c.bf16 %v51_v16, %v50_v15  ;;  %v229_v20 = vpack.c.bf16 %v53_v19, %v52_v18  ;;  %v54_v21 = vld [vmem:[#allocation2 + $0x60] sm:$0xff]  ;;  %v55_v22 = vld [vmem:[#allocation2 + $0x68] sm:$0xff]  ;;  %v56_v24 = vld [vmem:[#allocation2 + $0x70] sm:$0xff]  ;;  %p271_p8 = scmp.ne.s32.totalorder %s141_s1, %s270_s27  ;;  %p276_p10 = scmp.lt.s32.totalorder %s270_s27, %s270_s27 }
  0x19   :  { %34 = vperm.xlu0 %247, %v27_v6   ;;  %214 = vmatprep.subr.bf16.mxu0 %v213_v8  ;;  %v233_v23 = vpack.c.bf16 %v55_v22, %v54_v21  ;;  %v57_v25 = vld [vmem:[#allocation2 + $0x78] sm:$0xff] }
  0x1a   :  { %v237_v26 = vpack.c.bf16 %v57_v25, %v56_v24  ;;  %p277_p11 = por %p276_p10, %p275_p9 }
  0x1c   :  { %216 = vmatpush3.bf16.msra.mxu0 %v213_v8  ;;  %p278_p12 = pnand %p277_p11, %p271_p8 }
  0x1d   :  { %218 = vmatprep.subr.bf16.mxu0 %v217_v11 }
  0x20   :  { %220 = vmatpush3.bf16.msra.mxu0 %v217_v11 }
  0x21   :  { %222 = vmatprep.subr.bf16.mxu0 %v221_v14 }
  0x24   :  { %224 = vmatpush3.bf16.msra.mxu0 %v221_v14 }
  0x25   :  { %226 = vmatprep.subr.bf16.mxu0 %v225_v17 }
  0x28   :  { %228 = vmatpush3.bf16.msra.mxu0 %v225_v17 }
  0x29   :  { %230 = vmatprep.subr.bf16.mxu0 %v229_v20 }
  0x2c   :  { %232 = vmatpush3.bf16.msra.mxu0 %v229_v20 }
  0x2d   :  { %234 = vmatprep.subr.bf16.mxu0 %v233_v23 }
  0x30   :  { %236 = vmatpush3.bf16.msra.mxu0 %v233_v23 }
  0x31   :  { %238 = vmatprep.subr.bf16.mxu0 %v237_v26 }
  0x34   :  { %240 = vmatpush3.bf16.msra.mxu0 %v237_v26 }
  0x94   :  { %v32_v29 = vpop.permute.xlu0 %31 }
  0x95   :  { %vm36_vm0 = vcmp.eq.s32.totalorder %v29_v28, %v32_v29 }
  0x96   :  { %206 = vmatprep.mubr.msk.f32.mxu0 %vm36_vm0, %v300_v30 }
  0x98   :  { %v35_v31 = vpop.permute.xlu0 %34 }
  0x99   :  { %vm37_vm1 = vcmp.eq.s32.totalorder %v29_v28, %v35_v31 }
  0x9a   :  { %207 = vmatmul.mubr.msk.f32.vlgmr.msra.gmra.mrb[0].mxu0 %vm37_vm1, %v300_v30 }
 0x16d   :  { %v208_v32 = vpop.f32.mrb[0].mxu0 }
 0x16e   :  { %134 = vst [vmem:[#allocation5 + $0x8] sm:$0xff] %v208_v32  ;;  %v124_v33 = vpop.f32.mrb[1].mxu0 }
 0x16f   :  { %133 = vst [vmem:[#allocation5] sm:$0xff] %v124_v33 }
 0x170   :  { %281 = shalt.err (!%p278_p12)
}
 0x171   :  { %s282_s30 = scalar_lea.hbm %s355_s2, 256 }
 0x172   :  { %p283_p13 = scmp.ne.s32.totalorder %s355_s2, %s282_s30  ;;  %p286_p0 = scmp.lt.u32.totalorder %s282_s30, %s355_s2 }
 0x174   :  { %p288_p1 = pnand %p286_p0, %p283_p13 }
 0x176   :  { %291 = shalt.err (!%p288_p1)
}
 0x177   :  { %146 = dma.vmem_to_hbm [thread:$0]  %s141_s1, 256, %s355_s2, [#allocation4], %s297_s19, %s297_s19, %s298_s20  }
 0x178   :  { %294 = dma.done.wait [#allocation4], 256  }
 0x179   :  { %295 = vsyncadd [#allocation4], 4294967040 }
 0x17a   :  { %150 = vsyncpa [#allocation3], 1 }
 0x17b   :  { %151 = vsyncpa [#allocation4], 1 }

</bundles_post_ra>
